<compile_context>
chip_gen: v7x
topology: tpu7x:2x2x1
jax: 0.10.0
libtpu: 0.0.40
codegen_flags: <defaults>
</compile_context>

<pallas_src>
import functools

import jax
import jax.numpy as jnp
from jax.experimental import pallas as pl
from jax.experimental.pallas import tpu as pltpu

_SMOOTH = 1e-5
_LANES = 128


def _dice_sums_kernel(x_ref, t_ref, st_ref, ss_ref, tt_ref, *,
                      block_n, hw, blocks_per_seg, n_unmasked,
                      apply_sigmoid, any_masked):
    """Accumulate per-row partial sums of s*t, s*s, t*t into (rows, 128) blocks.

    Grid = (P, blocks_per_seg): axis 0 ("parallel") splits the flattened
    spatial stream into P independent segments; axis 1 ("arbitrary") walks the
    lane-blocks of a segment.  Each output is a (P, rows, 128) accumulator
    whose block index is constant along axis 1, so it stays VMEM-resident for
    the whole segment and is written back to HBM only once per segment.
    """
    p = pl.program_id(0)
    nb = pl.program_id(1)
    gb = p * blocks_per_seg + nb          # global lane-block index (unclamped)
    rows = x_ref.shape[0]
    nchunk = block_n // _LANES

    @pl.when(nb == 0)
    def _():
        st_ref[...] = jnp.zeros_like(st_ref)
        ss_ref[...] = jnp.zeros_like(ss_ref)
        tt_ref[...] = jnp.zeros_like(tt_ref)

    # With many rows, three (rows, 128) f32 register partials would exceed the
    # 64-vreg file; accumulate straight into the VMEM-resident outputs instead.
    use_locals = rows <= 64

    def accumulate(masked):
        if masked:
            # Hoisted once per block (JAX does not CSE broadcast_in_dim).
            lane = jax.lax.broadcasted_iota(jnp.int32, (rows, _LANES), 1)
            base = gb * block_n + lane

        def chunk(q, carry):
            lo = pl.multiple_of(q * _LANES, _LANES)
            s = x_ref[:, pl.ds(lo, _LANES)].astype(jnp.float32)
            t = t_ref[:, pl.ds(lo, _LANES)].astype(jnp.float32)
            if apply_sigmoid:
                # The reference module applies torch.sigmoid when its
                # (misnamed) `softmax` flag is set.
                s = jax.nn.sigmoid(s)
            if masked:
                valid = (base + lo) < hw
                s = jnp.where(valid, s, 0.0)
                t = jnp.where(valid, t, 0.0)
            if use_locals:
                st_p, ss_p, tt_p = carry
                return (st_p + s * t, ss_p + s * s, tt_p + t * t)
            st_ref[...] += s * t
            ss_ref[...] += s * s
            tt_ref[...] += t * t
            return carry

        unroll = min(8, nchunk)
        if use_locals:
            zeros = jnp.zeros((rows, _LANES), jnp.float32)
            st_p, ss_p, tt_p = jax.lax.fori_loop(
                0, nchunk, chunk, (zeros, zeros, zeros), unroll=unroll)
            st_ref[...] += st_p
            ss_ref[...] += ss_p
            tt_ref[...] += tt_p
        else:
            jax.lax.fori_loop(0, nchunk, chunk, 0, unroll=unroll)

    if any_masked:
        # Only the ragged / phantom tail blocks pay the mask (iota + compare +
        # two selects per chunk); full blocks take the lean path.
        @pl.when(gb >= n_unmasked)
        def _():
            accumulate(masked=True)

        @pl.when(gb < n_unmasked)
        def _():
            accumulate(masked=False)
    else:
        accumulate(masked=False)


def dice_loss(inputs, target, n_classes, weight=None, softmax=False,
              max_block_n=None):
    """Pallas implementation of DiceLoss.forward.

    inputs, target: [B, C, H, W] with C == n_classes (same shape, as asserted
    by the PyTorch module).  Returns a scalar float32 loss.
    """
    assert inputs.shape == target.shape, (
        f"predict {inputs.shape} & target {target.shape} shape do not match")
    B, C, H, W = inputs.shape
    assert C == n_classes
    if weight is None:
        weight = [1.0] * n_classes
    w = jnp.asarray([float(v) for v in weight], jnp.float32)

    hw = H * W
    rows = B * C

    # Free logical views (no transpose): row r = (batch r // C, class r % C).
    x = inputs.reshape(rows, hw)
    t = target.reshape(rows, hw)

    hw_padded = ((hw + _LANES - 1) // _LANES) * _LANES

    # --- Lane-block sizing ---------------------------------------------------
    # Amortize the ~0.35 us per-grid-step overhead: target ~2 MiB per input
    # tile per step, capped so the double-buffered inputs stay within a
    # conservative cross-generation VMEM budget (v7x has only 64 MiB physical).
    in_bytes_per_col = rows * (x.dtype.itemsize + t.dtype.itemsize)
    target_bytes = 4 * 1024 * 1024          # both inputs combined, per step
    budget_bytes = 32 * 1024 * 1024         # 2x pipeline buffers of both inputs
    bn = max(target_bytes // in_bytes_per_col, _LANES)
    bn = min(bn, budget_bytes // (2 * in_bytes_per_col), hw_padded)
    if max_block_n is not None:
        bn = min(bn, int(max_block_n))
    bn = max((bn // _LANES) * _LANES, _LANES)

    n_blocks = pl.cdiv(hw, bn)              # real lane-blocks covering hw
    n_par = 2 if n_blocks >= 2 else 1       # feed both TensorCores on v7x
    blocks_per_seg = pl.cdiv(n_blocks, n_par)
    n_unmasked = hw // bn                   # blocks fully inside hw
    any_masked = (n_par * blocks_per_seg) > n_unmasked

    kernel = functools.partial(
        _dice_sums_kernel, block_n=bn, hw=hw, blocks_per_seg=blocks_per_seg,
        n_unmasked=n_unmasked, apply_sigmoid=bool(softmax),
        any_masked=any_masked)

    def in_map(p, nb):
        # Clamp phantom tail blocks (p*blocks_per_seg + nb >= n_blocks) onto
        # the last real block; their contribution is fully masked to zero.
        return (0, jnp.minimum(p * blocks_per_seg + nb, n_blocks - 1))

    in_spec = pl.BlockSpec((rows, bn), in_map)
    acc_spec = pl.BlockSpec((None, rows, _LANES), lambda p, nb: (p, 0, 0))
    acc_shape = jax.ShapeDtypeStruct((n_par, rows, _LANES), jnp.float32)

    # Explicit VMEM cap: double-buffered inputs + accumulators with headroom,
    # never above ~48 MiB so it fits v7x's 64 MiB physical VMEM and lifts the
    # 16 MiB default scoped limit on v5e when large tiles are in play.
    vmem_need = 2 * bn * in_bytes_per_col + 3 * 2 * rows * _LANES * 4
    vmem_limit = int(min(48 * 1024 * 1024,
                         max(8 * 1024 * 1024, 2 * vmem_need)))

    st, ss, tt = pl.pallas_call(
        kernel,
        out_shape=(acc_shape, acc_shape, acc_shape),
        grid_spec=pltpu.PrefetchScalarGridSpec(
            num_scalar_prefetch=0,
            grid=(n_par, blocks_per_seg),
            in_specs=[in_spec, in_spec],
            out_specs=(acc_spec, acc_spec, acc_spec),
        ),
        compiler_params=pltpu.CompilerParams(
            dimension_semantics=("parallel", "arbitrary"),
            vmem_limit_bytes=vmem_limit),
    )(x, t)

    # Tiny epilogue (a few hundred floats) — matches the torch per-class math.
    intersect = st.sum(axis=(0, 2)).reshape(B, C).sum(axis=0)   # (C,)
    z_sum = ss.sum(axis=(0, 2)).reshape(B, C).sum(axis=0)       # (C,)
    y_sum = tt.sum(axis=(0, 2)).reshape(B, C).sum(axis=0)       # (C,)
    dice = 1.0 - (2.0 * intersect + _SMOOTH) / (z_sum + y_sum + _SMOOTH)
    # TODO(synk): class_wise_dice (per-class .item() logging) is host-side
    # bookkeeping in the torch module and is not part of the returned loss.
    return jnp.sum(dice * w) / jnp.float32(n_classes)


def dice_loss_ref(inputs, target, n_classes, weight=None, softmax=False):
    """Pure-JAX reference matching the PyTorch forward."""
    if softmax:
        inputs = jax.nn.sigmoid(inputs)
    if weight is None:
        weight = [1.0] * n_classes
    loss = 0.0
    for i in range(n_classes):
        s = inputs[:, i].astype(jnp.float32)
        t = target[:, i].astype(jnp.float32)
        intersect = jnp.sum(s * t)
        y_sum = jnp.sum(t * t)
        z_sum = jnp.sum(s * s)
        dice = 1.0 - (2.0 * intersect + _SMOOTH) / (z_sum + y_sum + _SMOOTH)
        loss = loss + dice * weight[i]
    return loss / n_classes


if __name__ == "__main__":
    key = jax.random.PRNGKey(0)
    k1, k2, k3, k4, k5, k6 = jax.random.split(key, 6)

    # --- Test 1: standard shapes (softmax=False), H*W a multiple of 128 ------
    B, C, H, W = 2, 4, 16, 16  # n_classes = 4
    logits = jax.random.normal(k1, (B, C, H, W), dtype=jnp.float32)
    inputs = jax.nn.softmax(logits, axis=1)          # post-softmax probabilities
    labels = jax.random.randint(k2, (B, H, W), 0, C)
    target = jax.nn.one_hot(labels, C, axis=1, dtype=jnp.float32)  # [B,C,H,W]

    loss = jax.block_until_ready(dice_loss(inputs, target, n_classes=C))
    ref = jax.block_until_ready(dice_loss_ref(inputs, target, n_classes=C))
    assert abs(float(loss) - float(ref)) < 1e-5, (float(loss), float(ref))

    # --- Test 2: ragged spatial extent + fused sigmoid path (softmax=True) ---
    B2, C2, H2, W2 = 2, 4, 9, 13  # H*W = 117, not a multiple of 128
    x2 = jax.random.normal(k3, (B2, C2, H2, W2), dtype=jnp.float32)
    lab2 = jax.random.randint(k4, (B2, H2, W2), 0, C2)
    t2 = jax.nn.one_hot(lab2, C2, axis=1, dtype=jnp.float32)
    wts = [1.0, 2.0, 0.5, 1.5]

    loss2 = jax.block_until_ready(
        dice_loss(x2, t2, n_classes=C2, weight=wts, softmax=True))
    ref2 = jax.block_until_ready(
        dice_loss_ref(x2, t2, n_classes=C2, weight=wts, softmax=True))
    assert abs(float(loss2) - float(ref2)) < 1e-5, (float(loss2), float(ref2))

    # --- Test 3: multi-block grid, both parallel segments, phantom/ragged tail
    B3, C3, H3, W3 = 2, 4, 40, 33  # H*W = 1320 -> 3 real blocks of 512 + tail
    x3 = jax.random.normal(k5, (B3, C3, H3, W3), dtype=jnp.float32)
    lab3 = jax.random.randint(k6, (B3, H3, W3), 0, C3)
    t3 = jax.nn.one_hot(lab3, C3, axis=1, dtype=jnp.float32)

    loss3 = jax.block_until_ready(
        dice_loss(x3, t3, n_classes=C3, softmax=True, max_block_n=512))
    ref3 = jax.block_until_ready(
        dice_loss_ref(x3, t3, n_classes=C3, softmax=True))
    assert abs(float(loss3) - float(ref3)) < 1e-5, (float(loss3), float(ref3))

    print("KERNEL_OK")
</pallas_src>

<mosaic_0001>
module attributes {stable_mosaic.version = 11 : i64} {
  func.func @_dice_sums_kernel(%arg0: i32, %arg1: i32, %arg2: memref<8x256xf32, #tpu.memory_space<vmem>>, %arg3: memref<8x256xf32, #tpu.memory_space<vmem>>, %arg4: memref<1x8x128xf32, #tpu.memory_space<vmem>>, %arg5: memref<1x8x128xf32, #tpu.memory_space<vmem>>, %arg6: memref<1x8x128xf32, #tpu.memory_space<vmem>>) attributes {dimension_semantics = [#tpu.dimension_semantics<parallel>, #tpu.dimension_semantics<arbitrary>], iteration_bounds = array<i64: 1, 1>, scalar_prefetch = 0 : i64, scratch_operands = 0 : i64, tpu.core_type = #tpu.core_type<tc>, window_params = [{transform_indices = @transform_0, window_bounds = array<i64: 8, 256>}, {transform_indices = @transform_1, window_bounds = array<i64: 8, 256>}, {transform_indices = @transform_2, window_bounds = array<i64: 1, 8, 128>}, {transform_indices = @transform_3, window_bounds = array<i64: 1, 8, 128>}, {transform_indices = @transform_4, window_bounds = array<i64: 1, 8, 128>}]} {
    %c0_i32 = arith.constant 0 : i32
    %0 = arith.cmpi eq, %arg1, %c0_i32 : i32
    %1 = arith.extui %0 : i1 to i32
    %c0_i32_0 = arith.constant 0 : i32
    %2 = arith.cmpi ne, %1, %c0_i32_0 : i32
    scf.if %2 {
      %cst_24 = arith.constant 0.000000e+00 : f32
      %46 = vector.broadcast %cst_24 : f32 to vector<8x128xf32>
      %c0_25 = arith.constant 0 : index
      %c0_26 = arith.constant 0 : index
      %c0_27 = arith.constant 0 : index
      %47 = vector.load %arg4[%c0_25, %c0_26, %c0_27] : memref<1x8x128xf32, #tpu.memory_space<vmem>>, vector<1x8x128xf32>
      %48 = vector.shape_cast %47 : vector<1x8x128xf32> to vector<8x128xf32>
      %49 = vector.shape_cast %46 : vector<8x128xf32> to vector<1x8x128xf32>
      tpu.vector_store %arg4[%c0_25, %c0_26, %c0_27], %49 {strides = array<i32>} : memref<1x8x128xf32, #tpu.memory_space<vmem>>, vector<1x8x128xf32>,
      %cst_28 = arith.constant 0.000000e+00 : f32
      %50 = vector.broadcast %cst_28 : f32 to vector<8x128xf32>
      %c0_29 = arith.constant 0 : index
      %c0_30 = arith.constant 0 : index
      %c0_31 = arith.constant 0 : index
      %51 = vector.load %arg5[%c0_29, %c0_30, %c0_31] : memref<1x8x128xf32, #tpu.memory_space<vmem>>, vector<1x8x128xf32>
      %52 = vector.shape_cast %51 : vector<1x8x128xf32> to vector<8x128xf32>
      %53 = vector.shape_cast %50 : vector<8x128xf32> to vector<1x8x128xf32>
      tpu.vector_store %arg5[%c0_29, %c0_30, %c0_31], %53 {strides = array<i32>} : memref<1x8x128xf32, #tpu.memory_space<vmem>>, vector<1x8x128xf32>,
      %cst_32 = arith.constant 0.000000e+00 : f32
      %54 = vector.broadcast %cst_32 : f32 to vector<8x128xf32>
      %c0_33 = arith.constant 0 : index
      %c0_34 = arith.constant 0 : index
      %c0_35 = arith.constant 0 : index
      %55 = vector.load %arg6[%c0_33, %c0_34, %c0_35] : memref<1x8x128xf32, #tpu.memory_space<vmem>>, vector<1x8x128xf32>
      %56 = vector.shape_cast %55 : vector<1x8x128xf32> to vector<8x128xf32>
      %57 = vector.shape_cast %54 : vector<8x128xf32> to vector<1x8x128xf32>
      tpu.vector_store %arg6[%c0_33, %c0_34, %c0_35], %57 {strides = array<i32>} : memref<1x8x128xf32, #tpu.memory_space<vmem>>, vector<1x8x128xf32>,
    } else {
    }
    %cst = arith.constant 0.000000e+00 : f32
    %3 = vector.broadcast %cst : f32 to vector<8x128xf32>
    %c0_i32_1 = arith.constant 0 : i32
    %c128_i32 = arith.constant 128 : i32
    %4 = arith.muli %c0_i32_1, %c128_i32 : i32
    %5 = tpu.assume_multiple %4, 128 : i32
    %c0 = arith.constant 0 : index
    %6 = arith.index_cast %5 : i32 to index
    %7 = vector.load %arg2[%c0, %6] : memref<8x256xf32, #tpu.memory_space<vmem>>, vector<8x128xf32>
    %c0_2 = arith.constant 0 : index
    %8 = arith.index_cast %5 : i32 to index
    %9 = vector.load %arg3[%c0_2, %8] : memref<8x256xf32, #tpu.memory_space<vmem>>, vector<8x128xf32>
    %10 = arith.mulf %7, %9 : vector<8x128xf32>
    %11 = arith.addf %3, %10 : vector<8x128xf32>
    %12 = arith.mulf %7, %7 : vector<8x128xf32>
    %13 = arith.addf %3, %12 : vector<8x128xf32>
    %14 = arith.mulf %9, %9 : vector<8x128xf32>
    %15 = arith.addf %3, %14 : vector<8x128xf32>
    %c1_i32 = arith.constant 1 : i32
    %c128_i32_3 = arith.constant 128 : i32
    %16 = arith.muli %c1_i32, %c128_i32_3 : i32
    %17 = tpu.assume_multiple %16, 128 : i32
    %c0_4 = arith.constant 0 : index
    %18 = arith.index_cast %17 : i32 to index
    %19 = vector.load %arg2[%c0_4, %18] : memref<8x256xf32, #tpu.memory_space<vmem>>, vector<8x128xf32>
    %c0_5 = arith.constant 0 : index
    %20 = arith.index_cast %17 : i32 to index
    %21 = vector.load %arg3[%c0_5, %20] : memref<8x256xf32, #tpu.memory_space<vmem>>, vector<8x128xf32>
    %22 = arith.mulf %19, %21 : vector<8x128xf32>
    %23 = arith.addf %11, %22 : vector<8x128xf32>
    %24 = arith.mulf %19, %19 : vector<8x128xf32>
    %25 = arith.addf %13, %24 : vector<8x128xf32>
    %26 = arith.mulf %21, %21 : vector<8x128xf32>
    %27 = arith.addf %15, %26 : vector<8x128xf32>
    %c2_i32 = arith.constant 2 : i32
    %c0_6 = arith.constant 0 : index
    %c0_7 = arith.constant 0 : index
    %c0_8 = arith.constant 0 : index
    %28 = vector.load %arg4[%c0_6, %c0_7, %c0_8] : memref<1x8x128xf32, #tpu.memory_space<vmem>>, vector<1x8x128xf32>
    %29 = vector.shape_cast %28 : vector<1x8x128xf32> to vector<8x128xf32>
    %30 = arith.addf %29, %23 : vector<8x128xf32>
    %c0_9 = arith.constant 0 : index
    %c0_10 = arith.constant 0 : index
    %c0_11 = arith.constant 0 : index
    %31 = vector.load %arg4[%c0_9, %c0_10, %c0_11] : memref<1x8x128xf32, #tpu.memory_space<vmem>>, vector<1x8x128xf32>
    %32 = vector.shape_cast %31 : vector<1x8x128xf32> to vector<8x128xf32>
    %33 = vector.shape_cast %30 : vector<8x128xf32> to vector<1x8x128xf32>
    tpu.vector_store %arg4[%c0_9, %c0_10, %c0_11], %33 {strides = array<i32>} : memref<1x8x128xf32, #tpu.memory_space<vmem>>, vector<1x8x128xf32>,
    %c0_12 = arith.constant 0 : index
    %c0_13 = arith.constant 0 : index
    %c0_14 = arith.constant 0 : index
    %34 = vector.load %arg5[%c0_12, %c0_13, %c0_14] : memref<1x8x128xf32, #tpu.memory_space<vmem>>, vector<1x8x128xf32>
    %35 = vector.shape_cast %34 : vector<1x8x128xf32> to vector<8x128xf32>
    %36 = arith.addf %35, %25 : vector<8x128xf32>
    %c0_15 = arith.constant 0 : index
    %c0_16 = arith.constant 0 : index
    %c0_17 = arith.constant 0 : index
    %37 = vector.load %arg5[%c0_15, %c0_16, %c0_17] : memref<1x8x128xf32, #tpu.memory_space<vmem>>, vector<1x8x128xf32>
    %38 = vector.shape_cast %37 : vector<1x8x128xf32> to vector<8x128xf32>
    %39 = vector.shape_cast %36 : vector<8x128xf32> to vector<1x8x128xf32>
    tpu.vector_store %arg5[%c0_15, %c0_16, %c0_17], %39 {strides = array<i32>} : memref<1x8x128xf32, #tpu.memory_space<vmem>>, vector<1x8x128xf32>,
    %c0_18 = arith.constant 0 : index
    %c0_19 = arith.constant 0 : index
    %c0_20 = arith.constant 0 : index
    %40 = vector.load %arg6[%c0_18, %c0_19, %c0_20] : memref<1x8x128xf32, #tpu.memory_space<vmem>>, vector<1x8x128xf32>
    %41 = vector.shape_cast %40 : vector<1x8x128xf32> to vector<8x128xf32>
    %42 = arith.addf %41, %27 : vector<8x128xf32>
    %c0_21 = arith.constant 0 : index
    %c0_22 = arith.constant 0 : index
    %c0_23 = arith.constant 0 : index
    %43 = vector.load %arg6[%c0_21, %c0_22, %c0_23] : memref<1x8x128xf32, #tpu.memory_space<vmem>>, vector<1x8x128xf32>
    %44 = vector.shape_cast %43 : vector<1x8x128xf32> to vector<8x128xf32>
    %45 = vector.shape_cast %42 : vector<8x128xf32> to vector<1x8x128xf32>
    tpu.vector_store %arg6[%c0_21, %c0_22, %c0_23], %45 {strides = array<i32>} : memref<1x8x128xf32, #tpu.memory_space<vmem>>, vector<1x8x128xf32>,
    return
  }
  func.func @transform_0(%arg0: i32, %arg1: i32) -> (i32, i32) {
    %c1_i32 = arith.constant 1 : i32
    %0 = arith.muli %arg0, %c1_i32 : i32
    %1 = arith.addi %0, %arg1 : i32
    %c0_i32 = arith.constant 0 : i32
    %2 = arith.minsi %1, %c0_i32 : i32
    %c0_i32_0 = arith.constant 0 : i32
    %c0_i32_1 = arith.constant 0 : i32
    return %c0_i32_0, %2 : i32, i32
  }
  func.func @transform_1(%arg0: i32, %arg1: i32) -> (i32, i32) {
    %c1_i32 = arith.constant 1 : i32
    %0 = arith.muli %arg0, %c1_i32 : i32
    %1 = arith.addi %0, %arg1 : i32
    %c0_i32 = arith.constant 0 : i32
    %2 = arith.minsi %1, %c0_i32 : i32
    %c0_i32_0 = arith.constant 0 : i32
    %c0_i32_1 = arith.constant 0 : i32
    return %c0_i32_0, %2 : i32, i32
  }
  func.func @transform_2(%arg0: i32, %arg1: i32) -> (i32, i32, i32) {
    %c0_i32 = arith.constant 0 : i32
    %c0_i32_0 = arith.constant 0 : i32
    %c0_i32_1 = arith.constant 0 : i32
    return %arg0, %c0_i32, %c0_i32_0 : i32, i32, i32
  }
  func.func @transform_3(%arg0: i32, %arg1: i32) -> (i32, i32, i32) {
    %c0_i32 = arith.constant 0 : i32
    %c0_i32_0 = arith.constant 0 : i32
    %c0_i32_1 = arith.constant 0 : i32
    return %arg0, %c0_i32, %c0_i32_0 : i32, i32, i32
  }
  func.func @transform_4(%arg0: i32, %arg1: i32) -> (i32, i32, i32) {
    %c0_i32 = arith.constant 0 : i32
    %c0_i32_0 = arith.constant 0 : i32
    %c0_i32_1 = arith.constant 0 : i32
    return %arg0, %c0_i32, %c0_i32_0 : i32, i32, i32
  }
}

</mosaic_0001>

<bundles_post_ra>
// kernel: tpu_custom_call.1
= control target key start
LH: loop header
LB: loop body
LE: loop exit
PB: predicated region body
PF: predicated region fallthrough
CT: control target
= control target key end

     0   :  { %10 = vsyncpa [#allocation3], 0  ;;  %s369_s0 = inlined_call_operand.hbm [shape: f32[8,256], index: 0, kind: input, shape index: {}]   ;;  %s370_s1 = inlined_call_operand.hbm [shape: f32[8,256], index: 1, kind: input, shape index: {}]   ;;  %s371_s2 = inlined_call_operand.hbm [shape: f32[1,8,128], index: 2, kind: output, shape index: {0}]   ;;  %s372_s3 = inlined_call_operand.hbm [shape: f32[1,8,128], index: 3, kind: output, shape index: {1}]   ;;  %s373_s4 = inlined_call_operand.hbm [shape: f32[1,8,128], index: 4, kind: output, shape index: {2}]  }
   0x1   :  { %11 = vsyncpa [#allocation6], 0 }
   0x2   :  { %12 = vsyncpa [#allocation4], 0 }
   0x3   :  { %13 = vsyncpa [#allocation9], 0  ;;  %s265_s15 = smov [#allocation2]   ;;  %s266_s17 = smov [#allocation5]  }
   0x4   :  { %s26_s16 = sshll.u32 %s265_s15, 4  ;;  %s42_s18 = sshll.u32 %s266_s17, 4  ;;  %s27_s16 = int_to_ptr.vmem [resolvable:$true] %s26_s16  ;;  %s43_s18 = int_to_ptr.vmem [resolvable:$true] %s42_s18 }
   0x5   :  { %s147_s21 = scalar_lea.hbm %s369_s0, 256 }
   0x6   :  { %p148_p0 = scmp.ne.s32.totalorder %s369_s0, %s147_s21  ;;  %p151_p1 = scmp.lt.u32.totalorder %s147_s21, %s369_s0 }
   0x8   :  { %p153_p2 = pnand %p151_p1, %p148_p0 }
   0xa   :  { %156 = shalt.err (!%p153_p2)
}
   0xb   :  { %s157_s26 = scalar_lea.vmem %s27_s16, 256  ;;  %p162_p4 = scmp.lt.s32.totalorder %s27_s16, %s27_s16 }
   0xc   :  { %p158_p3 = scmp.ne.s32.totalorder %s27_s16, %s157_s26  ;;  %p163_p5 = scmp.lt.s32.totalorder %s157_s26, %s157_s26 }
   0xe   :  { %p164_p6 = por %p163_p5, %p162_p4 }
  0x10   :  { %p165_p7 = pnand %p164_p6, %p158_p3 }
  0x12   :  { %168 = shalt.err (!%p165_p7)
}
  0x13   :  { %29 = dma.hbm_to_vmem [thread:$0]  %s369_s0, 256, %s27_s16, [#allocation3]  }
  0x14   :  { %s169_s5 = scalar_lea.hbm %s370_s1, 256 }
  0x15   :  { %p170_p8 = scmp.ne.s32.totalorder %s370_s1, %s169_s5  ;;  %p173_p9 = scmp.lt.u32.totalorder %s169_s5, %s370_s1 }
  0x17   :  { %p175_p10 = pnand %p173_p9, %p170_p8 }
  0x19   :  { %178 = shalt.err (!%p175_p10)
}
  0x1a   :  { %s179_s10 = scalar_lea.vmem %s43_s18, 256  ;;  %p184_p12 = scmp.lt.s32.totalorder %s43_s18, %s43_s18 }
  0x1b   :  { %p180_p11 = scmp.ne.s32.totalorder %s43_s18, %s179_s10  ;;  %p185_p13 = scmp.lt.s32.totalorder %s179_s10, %s179_s10 }
  0x1d   :  { %p186_p0 = por %p185_p13, %p184_p12 }
  0x1f   :  { %p187_p1 = pnand %p186_p0, %p180_p11 }
  0x21   :  { %190 = shalt.err (!%p187_p1)
}
  0x22   :  { %45 = dma.hbm_to_vmem [thread:$0]  %s370_s1, 256, %s43_s18, [#allocation6]  }
  0x23   :  { %257 = dma.done.wait [#allocation3], 256  }
  0x24   :  { %258 = vsyncadd [#allocation3], 4294967040 }
  0x25   :  { %259 = dma.done.wait [#allocation6], 256  }
  0x26   :  { %260 = vsyncadd [#allocation6], 4294967040  ;;  %v67_v0 = vld [vmem:[#allocation2] sm:$0xff]  ;;  %v76_v1 = vld [vmem:[#allocation2 + $0x8] sm:$0xff]  ;;  %s267_s12 = smov [#allocation8]   ;;  %s268_s14 = smov [#allocation7]  }
  0x27   :  { %v68_v2 = vld [vmem:[#allocation5] sm:$0xff]  ;;  %v71_v3 = vmul.f32 %v67_v0, %v67_v0  ;;  %v81_v4 = vmul.f32 %v76_v1, %v76_v1  ;;  %v78_v6 = vld [vmem:[#allocation5 + $0x8] sm:$0xff]  ;;  %s110_s13 = sshll.u32 %s267_s12, 4  ;;  %s100_s15 = sshll.u32 %s268_s14, 4  ;;  %s111_s13 = int_to_ptr.vmem [resolvable:$true] %s110_s13  ;;  %s319_s15 = int_to_ptr.vmem [resolvable:$true] %s100_s15 }
  0x28   :  { %v69_v5 = vmul.f32 %v68_v2, %v67_v0  ;;  %v73_v7 = vmul.f32 %v68_v2, %v68_v2  ;;  %v79_v8 = vmul.f32 %v78_v6, %v76_v1  ;;  %v83_v9 = vmul.f32 %v78_v6, %v78_v6  ;;  %s269_s1 = smov [#allocation10]   ;;  %s191_s17 = scalar_lea.vmem %s111_s13, 128 }
  0x29   :  { %v82_v10 = vadd.f32 %v81_v4, %v71_v3  ;;  %s120_s16 = sshll.u32 %s269_s1, 4  ;;  %p192_p2 = scmp.ne.s32.totalorder %s111_s13, %s191_s17  ;;  %s321_s16 = int_to_ptr.vmem [resolvable:$true] %s120_s16 }
  0x2a   :  { %v80_v11 = vadd.f32 %v79_v8, %v69_v5  ;;  %v84_v12 = vadd.f32 %v83_v9, %v73_v7  ;;  %p196_p3 = scmp.lt.s32.totalorder %s111_s13, %s111_s13  ;;  %p197_p4 = scmp.lt.s32.totalorder %s191_s17, %s191_s17 }
  0x2b   :  { %90 = vst [vmem:[#allocation8] sm:$0xff] %v82_v10 }
  0x2c   :  { %87 = vst [vmem:[#allocation7] sm:$0xff] %v80_v11  ;;  %93 = vst [vmem:[#allocation10] sm:$0xff] %v84_v12  ;;  %p198_p5 = por %p197_p4, %p196_p3 }
  0x2e   :  { %p199_p6 = pnand %p198_p5, %p192_p2 }
  0x30   :  { %202 = shalt.err (!%p199_p6)
}
  0x31   :  { %s203_s20 = scalar_lea.hbm %s372_s3, 128 }
  0x32   :  { %p204_p7 = scmp.ne.s32.totalorder %s372_s3, %s203_s20  ;;  %p207_p8 = scmp.lt.u32.totalorder %s203_s20, %s372_s3 }
  0x34   :  { %p209_p9 = pnand %p207_p8, %p204_p7 }
  0x36   :  { %212 = shalt.err (!%p209_p9)
}
  0x37   :  { %113 = dma.vmem_to_hbm [thread:$0]  %s111_s13, 128, %s372_s3, [#allocation9]  }
  0x38   :  { %s213_s27 = scalar_lea.vmem %s319_s15, 128  ;;  %p218_p11 = scmp.lt.s32.totalorder %s319_s15, %s319_s15 }
  0x39   :  { %p214_p10 = scmp.ne.s32.totalorder %s319_s15, %s213_s27  ;;  %p219_p12 = scmp.lt.s32.totalorder %s213_s27, %s213_s27 }
  0x3b   :  { %p220_p13 = por %p219_p12, %p218_p11 }
  0x3d   :  { %p221_p0 = pnand %p220_p13, %p214_p10 }
  0x3f   :  { %224 = shalt.err (!%p221_p0)
}
  0x40   :  { %s225_s30 = scalar_lea.hbm %s371_s2, 128 }
  0x41   :  { %p226_p1 = scmp.ne.s32.totalorder %s371_s2, %s225_s30  ;;  %p229_p2 = scmp.lt.u32.totalorder %s225_s30, %s371_s2 }
  0x43   :  { %p231_p3 = pnand %p229_p2, %p226_p1 }
  0x45   :  { %234 = shalt.err (!%p231_p3)
}
  0x46   :  { %103 = dma.vmem_to_hbm [thread:$0]  %s319_s15, 128, %s371_s2, [#allocation4]  }
  0x47   :  { %s235_s10 = scalar_lea.vmem %s321_s16, 128  ;;  %p240_p5 = scmp.lt.s32.totalorder %s321_s16, %s321_s16 }
  0x48   :  { %p236_p4 = scmp.ne.s32.totalorder %s321_s16, %s235_s10  ;;  %p241_p6 = scmp.lt.s32.totalorder %s235_s10, %s235_s10 }
  0x4a   :  { %p242_p7 = por %p241_p6, %p240_p5 }
  0x4c   :  { %p243_p8 = pnand %p242_p7, %p236_p4 }
  0x4e   :  { %246 = shalt.err (!%p243_p8)
}
  0x4f   :  { %s247_s12 = scalar_lea.hbm %s373_s4, 128 }
  0x50   :  { %p248_p9 = scmp.ne.s32.totalorder %s373_s4, %s247_s12  ;;  %p251_p10 = scmp.lt.u32.totalorder %s247_s12, %s373_s4 }
  0x52   :  { %p253_p11 = pnand %p251_p10, %p248_p9 }
  0x54   :  { %256 = shalt.err (!%p253_p11)
}
  0x55   :  { %123 = dma.vmem_to_hbm [thread:$0]  %s321_s16, 128, %s373_s4, [#allocation9]  }
  0x56   :  { %261 = dma.done.wait [#allocation4], 128  }
  0x57   :  { %262 = vsyncadd [#allocation4], 4294967168 }
  0x58   :  { %263 = dma.done.wait [#allocation9], 256  }
  0x59   :  { %264 = vsyncadd [#allocation9], 4294967040 }
  0x5a   :  { %133 = vsyncpa [#allocation3], 1 }
  0x5b   :  { %134 = vsyncpa [#allocation6], 1 }
  0x5c   :  { %135 = vsyncpa [#allocation4], 1 }
  0x5d   :  { %136 = vsyncpa [#allocation9], 1 }

</bundles_post_ra>
